<compile_context>
chip_gen: v5e
topology: v5e:2x2
jax: 0.10.0
libtpu: 0.0.40
codegen_flags: <defaults>
</compile_context>

<pallas_src>
import math

import jax
import jax.numpy as jnp
from jax.experimental import pallas as pl
from jax.experimental.pallas import tpu as pltpu

# ----------------------------- model config -----------------------------
B = 2          # batch
S = 8          # sequence length
D_MODEL = 32   # d_model
NUM_HEADS = 4
D_HEAD = D_MODEL // NUM_HEADS
D_FF = 64
EPS = 1e-5     # nn.LayerNorm default eps

# 128-lane-aligned column offsets inside the packed weight slab (64, 512)
_QKV_OFF = 0      # (D_MODEL, 3*D_MODEL) rows 0:D_MODEL, cols   0: 96
_WO_OFF = 128     # (D_MODEL, D_MODEL)   rows 0:D_MODEL, cols 128:160
_W1_OFF = 256     # (D_MODEL, D_FF)      rows 0:D_MODEL, cols 256:320
_W2_OFF = 384     # (D_FF, D_MODEL)      rows 0:D_FF,    cols 384:416
W_SLAB_COLS = 512
VEC_COLS = 128    # bias / gamma / beta slab, lane-padded to 128


def _layernorm(x, gamma, beta):
    # x: (R, D); gamma/beta: (1, D)
    mu = jnp.mean(x, axis=-1, keepdims=True)
    xc = x - mu
    var = jnp.mean(xc * xc, axis=-1, keepdims=True)
    inv = jax.lax.rsqrt(var + EPS)
    return xc * inv * gamma + beta


def encoder_layer_kernel(x_ref, w_ref, vec_ref, o_ref):
    x = x_ref[...]                                                   # (B*S, D)
    vec = vec_ref[...]                                               # (8, 128)

    # static, 128-lane-aligned sub-slices of the packed weight slab
    wqkv = w_ref[0:D_MODEL, _QKV_OFF:_QKV_OFF + 3 * D_MODEL]         # (32, 96)
    wo = w_ref[0:D_MODEL, _WO_OFF:_WO_OFF + D_MODEL]                 # (32, 32)
    w1 = w_ref[0:D_MODEL, _W1_OFF:_W1_OFF + D_FF]                    # (32, 64)
    w2 = w_ref[0:D_FF, _W2_OFF:_W2_OFF + D_MODEL]                    # (64, 32)

    b_qkv = vec[0:1, 0:3 * D_MODEL]
    bo = vec[1:2, 0:D_MODEL]
    g1 = vec[2:3, 0:D_MODEL]
    be1 = vec[3:4, 0:D_MODEL]
    b1 = vec[4:5, 0:D_FF]
    b2 = vec[5:6, 0:D_MODEL]
    g2 = vec[6:7, 0:D_MODEL]
    be2 = vec[7:8, 0:D_MODEL]

    # ---- fused QKV projection for all B*S tokens (one MXU matmul) -------
    qkv = jnp.dot(x, wqkv, preferred_element_type=jnp.float32) + b_qkv   # (16, 96)

    # ---- build (B*H, S, D_HEAD) token-major views of Q / K / V ----------
    def split_heads(col_off):
        tiles = []
        for b in range(B):                      # static unroll, B*H = 8 tiles
            r = b * S
            for h in range(NUM_HEADS):
                c = col_off + h * D_HEAD
                tiles.append(qkv[r:r + S, c:c + D_HEAD][None, :, :])
        return jnp.concatenate(tiles, axis=0)   # (B*H, S, D_HEAD)

    q = split_heads(0)
    k = split_heads(D_MODEL)
    v = split_heads(2 * D_MODEL)

    # ---- ONE batched contraction for Q.K^T over all (batch, head) -------
    # Contraction is over the last dim of both operands -> no explicit .T.
    scale = 1.0 / math.sqrt(D_HEAD)
    s = jnp.einsum('gqd,gkd->gqk', q, k,
                   preferred_element_type=jnp.float32) * scale       # (8, 8, 8)

    # ---- single softmax over all (batch, head) rows, exact divide -------
    s = s - jnp.max(s, axis=-1, keepdims=True)
    p = jnp.exp(s)
    p = p / jnp.sum(p, axis=-1, keepdims=True)

    # ---- ONE batched contraction for P.V ---------------------------------
    ctx = jnp.einsum('gqk,gkd->gqd', p, v,
                     preferred_element_type=jnp.float32)              # (8, 8, 8)

    # ---- merge heads back to (B*S, D_MODEL) -------------------------------
    rows = []
    for b in range(B):
        rows.append(jnp.concatenate(
            [ctx[b * NUM_HEADS + h] for h in range(NUM_HEADS)], axis=-1))  # (S, D)
    attn = jnp.concatenate(rows, axis=0)                               # (B*S, D)
    attn = jnp.dot(attn, wo, preferred_element_type=jnp.float32) + bo

    # ---- residual + LayerNorm 1 -------------------------------------------
    h1 = _layernorm(x + attn, g1, be1)

    # ---- feed forward: Linear -> ReLU -> (dropout=identity) -> Linear -----
    f = jnp.maximum(jnp.dot(h1, w1, preferred_element_type=jnp.float32) + b1, 0.0)
    f = jnp.dot(f, w2, preferred_element_type=jnp.float32) + b2

    # ---- residual + LayerNorm 2 -------------------------------------------
    o_ref[...] = _layernorm(h1 + f, g2, be2).astype(o_ref.dtype)


# ----------------------------- host-side packing -----------------------------
def _pack_params(params):
    (wq, bq, wk, bk, wv, bv, wo, bo, g1, be1, w1, b1, w2, b2, g2, be2) = params

    w_slab = jnp.zeros((D_FF, W_SLAB_COLS), jnp.float32)
    w_slab = w_slab.at[0:D_MODEL, _QKV_OFF:_QKV_OFF + 3 * D_MODEL].set(
        jnp.concatenate([wq, wk, wv], axis=1))
    w_slab = w_slab.at[0:D_MODEL, _WO_OFF:_WO_OFF + D_MODEL].set(wo)
    w_slab = w_slab.at[0:D_MODEL, _W1_OFF:_W1_OFF + D_FF].set(w1)
    w_slab = w_slab.at[0:D_FF, _W2_OFF:_W2_OFF + D_MODEL].set(w2)

    vec = jnp.zeros((8, VEC_COLS), jnp.float32)
    vec = vec.at[0, 0:3 * D_MODEL].set(jnp.concatenate([bq[0], bk[0], bv[0]]))
    vec = vec.at[1, 0:D_MODEL].set(bo[0])
    vec = vec.at[2, 0:D_MODEL].set(g1[0])
    vec = vec.at[3, 0:D_MODEL].set(be1[0])
    vec = vec.at[4, 0:D_FF].set(b1[0])
    vec = vec.at[5, 0:D_MODEL].set(b2[0])
    vec = vec.at[6, 0:D_MODEL].set(g2[0])
    vec = vec.at[7, 0:D_MODEL].set(be2[0])
    return w_slab, vec


@jax.jit
def encoder_layer(x, params):
    """x: (B, S, D_MODEL) float32 -> (B, S, D_MODEL)."""
    w_slab, vec = _pack_params(params)
    x2 = x.reshape(B * S, D_MODEL)     # fold batch into rows (metadata only)

    out2 = pl.pallas_call(
        encoder_layer_kernel,
        out_shape=jax.ShapeDtypeStruct((B * S, D_MODEL), x.dtype),
        grid_spec=pltpu.PrefetchScalarGridSpec(
            num_scalar_prefetch=0,
            grid=(1,),                                      # single invocation
            in_specs=[
                pl.BlockSpec((B * S, D_MODEL), lambda i: (0, 0)),
                pl.BlockSpec((D_FF, W_SLAB_COLS), lambda i: (0, 0)),
                pl.BlockSpec((8, VEC_COLS), lambda i: (0, 0)),
            ],
            out_specs=pl.BlockSpec((B * S, D_MODEL), lambda i: (0, 0)),
        ),
        compiler_params=pltpu.CompilerParams(
            dimension_semantics=("arbitrary",)),
    )(x2, w_slab, vec)
    return out2.reshape(B, S, D_MODEL)


# ----------------------------- pure-JAX reference -----------------------------
def encoder_layer_ref(x, params):
    (wq, bq, wk, bk, wv, bv, wo, bo, g1, be1, w1, b1, w2, b2, g2, be2) = params
    HI = jax.lax.Precision.HIGHEST

    def ln(h, g, b):
        mu = jnp.mean(h, axis=-1, keepdims=True)
        var = jnp.mean((h - mu) ** 2, axis=-1, keepdims=True)
        return (h - mu) / jnp.sqrt(var + EPS) * g + b

    q = jnp.dot(x, wq, precision=HI) + bq
    k = jnp.dot(x, wk, precision=HI) + bk
    v = jnp.dot(x, wv, precision=HI) + bv
    q = q.reshape(B, S, NUM_HEADS, D_HEAD).transpose(0, 2, 1, 3)
    k = k.reshape(B, S, NUM_HEADS, D_HEAD).transpose(0, 2, 1, 3)
    v = v.reshape(B, S, NUM_HEADS, D_HEAD).transpose(0, 2, 1, 3)
    s = jnp.einsum("bhqd,bhkd->bhqk", q, k, precision=HI) / math.sqrt(D_HEAD)
    p = jax.nn.softmax(s, axis=-1)
    a = jnp.einsum("bhqk,bhkd->bhqd", p, v,
                   precision=HI).transpose(0, 2, 1, 3).reshape(B, S, D_MODEL)
    a = jnp.dot(a, wo, precision=HI) + bo
    h1 = ln(x + a, g1, be1)
    f = jnp.maximum(jnp.dot(h1, w1, precision=HI) + b1, 0.0)
    f = jnp.dot(f, w2, precision=HI) + b2
    return ln(h1 + f, g2, be2)


# ----------------------------- param init -----------------------------
def init_params(key):
    ks = jax.random.split(key, 8)
    sc_d = 1.0 / math.sqrt(D_MODEL)
    sc_f = 1.0 / math.sqrt(D_FF)
    wq = jax.random.normal(ks[0], (D_MODEL, D_MODEL), jnp.float32) * sc_d
    wk = jax.random.normal(ks[1], (D_MODEL, D_MODEL), jnp.float32) * sc_d
    wv = jax.random.normal(ks[2], (D_MODEL, D_MODEL), jnp.float32) * sc_d
    wo = jax.random.normal(ks[3], (D_MODEL, D_MODEL), jnp.float32) * sc_d
    bq = jnp.zeros((1, D_MODEL), jnp.float32)
    bk = jnp.zeros((1, D_MODEL), jnp.float32)
    bv = jnp.zeros((1, D_MODEL), jnp.float32)
    bo = jnp.zeros((1, D_MODEL), jnp.float32)
    g1 = jnp.ones((1, D_MODEL), jnp.float32)
    be1 = jnp.zeros((1, D_MODEL), jnp.float32)
    w1 = jax.random.normal(ks[4], (D_MODEL, D_FF), jnp.float32) * sc_d
    b1 = jax.random.normal(ks[5], (1, D_FF), jnp.float32) * 0.01
    w2 = jax.random.normal(ks[6], (D_FF, D_MODEL), jnp.float32) * sc_f
    b2 = jax.random.normal(ks[7], (1, D_MODEL), jnp.float32) * 0.01
    g2 = jnp.ones((1, D_MODEL), jnp.float32)
    be2 = jnp.zeros((1, D_MODEL), jnp.float32)
    return (wq, bq, wk, bk, wv, bv, wo, bo, g1, be1, w1, b1, w2, b2, g2, be2)


if __name__ == "__main__":
    key = jax.random.PRNGKey(0)
    kx, kp = jax.random.split(key)
    x = jax.random.normal(kx, (B, S, D_MODEL), jnp.float32)
    params = init_params(kp)

    out = jax.block_until_ready(encoder_layer(x, params))
    ref = encoder_layer_ref(x, params)

    assert out.shape == (B, S, D_MODEL)
    # Exact softmax divide (approx reciprocal removed) -> tolerance tightened
    # from 2e-3 to 1e-3; residual difference is only MXU f32 accumulation.
    assert jnp.allclose(out, ref, atol=1e-3, rtol=1e-3), (
        f"mismatch vs reference: max |err| = {jnp.max(jnp.abs(out - ref))}")

    print("KERNEL_OK")
</pallas_src>

<mosaic_0001>
module attributes {stable_mosaic.version = 11 : i64} {
  func.func @encoder_layer_kernel(%arg0: i32, %arg1: memref<16x32xf32, #tpu.memory_space<vmem>>, %arg2: memref<64x512xf32, #tpu.memory_space<vmem>>, %arg3: memref<8x128xf32, #tpu.memory_space<vmem>>, %arg4: memref<16x32xf32, #tpu.memory_space<vmem>>) attributes {dimension_semantics = [#tpu.dimension_semantics<arbitrary>], iteration_bounds = array<i64: 1>, scalar_prefetch = 0 : i64, scratch_operands = 0 : i64, tpu.core_type = #tpu.core_type<tc>, window_params = [{pipeline_mode = #tpu.pipeline_mode<synchronous>, transform_indices = @transform_0, window_bounds = array<i64: 16, 32>}, {pipeline_mode = #tpu.pipeline_mode<synchronous>, transform_indices = @transform_1, window_bounds = array<i64: 64, 512>}, {pipeline_mode = #tpu.pipeline_mode<synchronous>, transform_indices = @transform_2, window_bounds = array<i64: 8, 128>}, {pipeline_mode = #tpu.pipeline_mode<synchronous>, transform_indices = @transform_3, window_bounds = array<i64: 16, 32>}]} {
    %c0 = arith.constant 0 : index
    %c0_0 = arith.constant 0 : index
    %0 = vector.load %arg1[%c0, %c0_0] : memref<16x32xf32, #tpu.memory_space<vmem>>, vector<16x32xf32>
    %c0_1 = arith.constant 0 : index
    %c0_2 = arith.constant 0 : index
    %1 = vector.load %arg3[%c0_1, %c0_2] : memref<8x128xf32, #tpu.memory_space<vmem>>, vector<8x128xf32>
    %c0_3 = arith.constant 0 : index
    %c0_4 = arith.constant 0 : index
    %2 = vector.load %arg2[%c0_3, %c0_4] : memref<64x512xf32, #tpu.memory_space<vmem>>, vector<32x96xf32>
    %c0_5 = arith.constant 0 : index
    %c128 = arith.constant 128 : index
    %3 = vector.load %arg2[%c0_5, %c128] : memref<64x512xf32, #tpu.memory_space<vmem>>, vector<32x32xf32>
    %c0_6 = arith.constant 0 : index
    %c256 = arith.constant 256 : index
    %4 = vector.load %arg2[%c0_6, %c256] : memref<64x512xf32, #tpu.memory_space<vmem>>, vector<32x64xf32>
    %c0_7 = arith.constant 0 : index
    %c384 = arith.constant 384 : index
    %5 = vector.load %arg2[%c0_7, %c384] : memref<64x512xf32, #tpu.memory_space<vmem>>, vector<64x32xf32>
    %6 = vector.extract_strided_slice %1 {offsets = [0, 0], sizes = [1, 96], strides = [1, 1]} : vector<8x128xf32> to vector<1x96xf32>
    %7 = vector.extract_strided_slice %1 {offsets = [1, 0], sizes = [1, 32], strides = [1, 1]} : vector<8x128xf32> to vector<1x32xf32>
    %8 = vector.extract_strided_slice %1 {offsets = [2, 0], sizes = [1, 32], strides = [1, 1]} : vector<8x128xf32> to vector<1x32xf32>
    %9 = vector.extract_strided_slice %1 {offsets = [3, 0], sizes = [1, 32], strides = [1, 1]} : vector<8x128xf32> to vector<1x32xf32>
    %10 = vector.extract_strided_slice %1 {offsets = [4, 0], sizes = [1, 64], strides = [1, 1]} : vector<8x128xf32> to vector<1x64xf32>
    %11 = vector.extract_strided_slice %1 {offsets = [5, 0], sizes = [1, 32], strides = [1, 1]} : vector<8x128xf32> to vector<1x32xf32>
    %12 = vector.extract_strided_slice %1 {offsets = [6, 0], sizes = [1, 32], strides = [1, 1]} : vector<8x128xf32> to vector<1x32xf32>
    %13 = vector.extract_strided_slice %1 {offsets = [7, 0], sizes = [1, 32], strides = [1, 1]} : vector<8x128xf32> to vector<1x32xf32>
    %cst = arith.constant dense<0.000000e+00> : vector<16x96xf32>
    %14 = tpu.matmul %0, %2, %cst {dimension_numbers = #tpu.dot_dimension_numbers<[1], [0], [0], [1], [0, 0, 1, 1], [], []>} : vector<16x32xf32>, vector<32x96xf32>, vector<16x96xf32> -> vector<16x96xf32>
    %15 = vector.broadcast %6 : vector<1x96xf32> to vector<16x96xf32>
    %16 = arith.addf %14, %15 : vector<16x96xf32>
    %17 = vector.extract_strided_slice %16 {offsets = [0, 0], sizes = [8, 8], strides = [1, 1]} : vector<16x96xf32> to vector<8x8xf32>
    %18 = vector.shape_cast %17 : vector<8x8xf32> to vector<1x8x8xf32>
    %19 = vector.extract_strided_slice %16 {offsets = [0, 8], sizes = [8, 8], strides = [1, 1]} : vector<16x96xf32> to vector<8x8xf32>
    %20 = vector.shape_cast %19 : vector<8x8xf32> to vector<1x8x8xf32>
    %21 = vector.extract_strided_slice %16 {offsets = [0, 16], sizes = [8, 8], strides = [1, 1]} : vector<16x96xf32> to vector<8x8xf32>
    %22 = vector.shape_cast %21 : vector<8x8xf32> to vector<1x8x8xf32>
    %23 = vector.extract_strided_slice %16 {offsets = [0, 24], sizes = [8, 8], strides = [1, 1]} : vector<16x96xf32> to vector<8x8xf32>
    %24 = vector.shape_cast %23 : vector<8x8xf32> to vector<1x8x8xf32>
    %25 = vector.extract_strided_slice %16 {offsets = [8, 0], sizes = [8, 8], strides = [1, 1]} : vector<16x96xf32> to vector<8x8xf32>
    %26 = vector.shape_cast %25 : vector<8x8xf32> to vector<1x8x8xf32>
    %27 = vector.extract_strided_slice %16 {offsets = [8, 8], sizes = [8, 8], strides = [1, 1]} : vector<16x96xf32> to vector<8x8xf32>
    %28 = vector.shape_cast %27 : vector<8x8xf32> to vector<1x8x8xf32>
    %29 = vector.extract_strided_slice %16 {offsets = [8, 16], sizes = [8, 8], strides = [1, 1]} : vector<16x96xf32> to vector<8x8xf32>
    %30 = vector.shape_cast %29 : vector<8x8xf32> to vector<1x8x8xf32>
    %31 = vector.extract_strided_slice %16 {offsets = [8, 24], sizes = [8, 8], strides = [1, 1]} : vector<16x96xf32> to vector<8x8xf32>
    %32 = vector.shape_cast %31 : vector<8x8xf32> to vector<1x8x8xf32>
    %33 = tpu.concatenate %18, %20, %22, %24, %26, %28, %30, %32 in 0 : vector<1x8x8xf32>, vector<1x8x8xf32>, vector<1x8x8xf32>, vector<1x8x8xf32>, vector<1x8x8xf32>, vector<1x8x8xf32>, vector<1x8x8xf32>, vector<1x8x8xf32> -> vector<8x8x8xf32>
    %34 = vector.extract_strided_slice %16 {offsets = [0, 32], sizes = [8, 8], strides = [1, 1]} : vector<16x96xf32> to vector<8x8xf32>
    %35 = vector.shape_cast %34 : vector<8x8xf32> to vector<1x8x8xf32>
    %36 = vector.extract_strided_slice %16 {offsets = [0, 40], sizes = [8, 8], strides = [1, 1]} : vector<16x96xf32> to vector<8x8xf32>
    %37 = vector.shape_cast %36 : vector<8x8xf32> to vector<1x8x8xf32>
    %38 = vector.extract_strided_slice %16 {offsets = [0, 48], sizes = [8, 8], strides = [1, 1]} : vector<16x96xf32> to vector<8x8xf32>
    %39 = vector.shape_cast %38 : vector<8x8xf32> to vector<1x8x8xf32>
    %40 = vector.extract_strided_slice %16 {offsets = [0, 56], sizes = [8, 8], strides = [1, 1]} : vector<16x96xf32> to vector<8x8xf32>
    %41 = vector.shape_cast %40 : vector<8x8xf32> to vector<1x8x8xf32>
    %42 = vector.extract_strided_slice %16 {offsets = [8, 32], sizes = [8, 8], strides = [1, 1]} : vector<16x96xf32> to vector<8x8xf32>
    %43 = vector.shape_cast %42 : vector<8x8xf32> to vector<1x8x8xf32>
    %44 = vector.extract_strided_slice %16 {offsets = [8, 40], sizes = [8, 8], strides = [1, 1]} : vector<16x96xf32> to vector<8x8xf32>
    %45 = vector.shape_cast %44 : vector<8x8xf32> to vector<1x8x8xf32>
    %46 = vector.extract_strided_slice %16 {offsets = [8, 48], sizes = [8, 8], strides = [1, 1]} : vector<16x96xf32> to vector<8x8xf32>
    %47 = vector.shape_cast %46 : vector<8x8xf32> to vector<1x8x8xf32>
    %48 = vector.extract_strided_slice %16 {offsets = [8, 56], sizes = [8, 8], strides = [1, 1]} : vector<16x96xf32> to vector<8x8xf32>
    %49 = vector.shape_cast %48 : vector<8x8xf32> to vector<1x8x8xf32>
    %50 = tpu.concatenate %35, %37, %39, %41, %43, %45, %47, %49 in 0 : vector<1x8x8xf32>, vector<1x8x8xf32>, vector<1x8x8xf32>, vector<1x8x8xf32>, vector<1x8x8xf32>, vector<1x8x8xf32>, vector<1x8x8xf32>, vector<1x8x8xf32> -> vector<8x8x8xf32>
    %51 = vector.extract_strided_slice %16 {offsets = [0, 64], sizes = [8, 8], strides = [1, 1]} : vector<16x96xf32> to vector<8x8xf32>
    %52 = vector.shape_cast %51 : vector<8x8xf32> to vector<1x8x8xf32>
    %53 = vector.extract_strided_slice %16 {offsets = [0, 72], sizes = [8, 8], strides = [1, 1]} : vector<16x96xf32> to vector<8x8xf32>
    %54 = vector.shape_cast %53 : vector<8x8xf32> to vector<1x8x8xf32>
    %55 = vector.extract_strided_slice %16 {offsets = [0, 80], sizes = [8, 8], strides = [1, 1]} : vector<16x96xf32> to vector<8x8xf32>
    %56 = vector.shape_cast %55 : vector<8x8xf32> to vector<1x8x8xf32>
    %57 = vector.extract_strided_slice %16 {offsets = [0, 88], sizes = [8, 8], strides = [1, 1]} : vector<16x96xf32> to vector<8x8xf32>
    %58 = vector.shape_cast %57 : vector<8x8xf32> to vector<1x8x8xf32>
    %59 = vector.extract_strided_slice %16 {offsets = [8, 64], sizes = [8, 8], strides = [1, 1]} : vector<16x96xf32> to vector<8x8xf32>
    %60 = vector.shape_cast %59 : vector<8x8xf32> to vector<1x8x8xf32>
    %61 = vector.extract_strided_slice %16 {offsets = [8, 72], sizes = [8, 8], strides = [1, 1]} : vector<16x96xf32> to vector<8x8xf32>
    %62 = vector.shape_cast %61 : vector<8x8xf32> to vector<1x8x8xf32>
    %63 = vector.extract_strided_slice %16 {offsets = [8, 80], sizes = [8, 8], strides = [1, 1]} : vector<16x96xf32> to vector<8x8xf32>
    %64 = vector.shape_cast %63 : vector<8x8xf32> to vector<1x8x8xf32>
    %65 = vector.extract_strided_slice %16 {offsets = [8, 88], sizes = [8, 8], strides = [1, 1]} : vector<16x96xf32> to vector<8x8xf32>
    %66 = vector.shape_cast %65 : vector<8x8xf32> to vector<1x8x8xf32>
    %67 = tpu.concatenate %52, %54, %56, %58, %60, %62, %64, %66 in 0 : vector<1x8x8xf32>, vector<1x8x8xf32>, vector<1x8x8xf32>, vector<1x8x8xf32>, vector<1x8x8xf32>, vector<1x8x8xf32>, vector<1x8x8xf32>, vector<1x8x8xf32> -> vector<8x8x8xf32>
    "tpu.trace_start"() <{level = 10 : i32, message = "gqd,gkd->gqk"}> : () -> ()
    %cst_8 = arith.constant dense<0.000000e+00> : vector<8x8x8xf32>
    %68 = tpu.matmul %33, %50, %cst_8 {dimension_numbers = #tpu.dot_dimension_numbers<[2], [2], [1], [1], [0, 0, 0, 1, 1, 1], [0], [0]>} : vector<8x8x8xf32>, vector<8x8x8xf32>, vector<8x8x8xf32> -> vector<8x8x8xf32>
    "tpu.trace_stop"() : () -> ()
    %cst_9 = arith.constant 0.353553385 : f32
    %69 = vector.broadcast %cst_9 : f32 to vector<8x8x8xf32>
    %70 = arith.mulf %68, %69 : vector<8x8x8xf32>
    %cst_10 = arith.constant dense<0xFF800000> : vector<8x8xf32>
    %71 = vector.multi_reduction <maximumf>, %70, %cst_10 [2] : vector<8x8x8xf32> to vector<8x8xf32>
    %72 = vector.shape_cast %71 : vector<8x8xf32> to vector<8x8x1xf32>
    %73 = vector.broadcast %72 : vector<8x8x1xf32> to vector<8x8x8xf32>
    %74 = arith.subf %70, %73 : vector<8x8x8xf32>
    %75 = math.exp %74 : vector<8x8x8xf32>
    %cst_11 = arith.constant dense<0.000000e+00> : vector<8x8xf32>
    %76 = vector.multi_reduction <add>, %75, %cst_11 [2] : vector<8x8x8xf32> to vector<8x8xf32>
    %77 = vector.shape_cast %76 : vector<8x8xf32> to vector<8x8x1xf32>
    %78 = vector.broadcast %77 : vector<8x8x1xf32> to vector<8x8x8xf32>
    %79 = arith.divf %75, %78 : vector<8x8x8xf32>
    "tpu.trace_start"() <{level = 10 : i32, message = "gqk,gkd->gqd"}> : () -> ()
    %cst_12 = arith.constant dense<0.000000e+00> : vector<8x8x8xf32>
    %80 = tpu.matmul %79, %67, %cst_12 {dimension_numbers = #tpu.dot_dimension_numbers<[2], [1], [1], [2], [0, 0, 0, 1, 1, 2], [0], [0]>} : vector<8x8x8xf32>, vector<8x8x8xf32>, vector<8x8x8xf32> -> vector<8x8x8xf32>
    "tpu.trace_stop"() : () -> ()
    %81 = vector.extract_strided_slice %80 {offsets = [0, 0, 0], sizes = [1, 8, 8], strides = [1, 1, 1]} : vector<8x8x8xf32> to vector<1x8x8xf32>
    %82 = vector.shape_cast %81 : vector<1x8x8xf32> to vector<8x8xf32>
    %83 = vector.extract_strided_slice %80 {offsets = [1, 0, 0], sizes = [1, 8, 8], strides = [1, 1, 1]} : vector<8x8x8xf32> to vector<1x8x8xf32>
    %84 = vector.shape_cast %83 : vector<1x8x8xf32> to vector<8x8xf32>
    %85 = vector.extract_strided_slice %80 {offsets = [2, 0, 0], sizes = [1, 8, 8], strides = [1, 1, 1]} : vector<8x8x8xf32> to vector<1x8x8xf32>
    %86 = vector.shape_cast %85 : vector<1x8x8xf32> to vector<8x8xf32>
    %87 = vector.extract_strided_slice %80 {offsets = [3, 0, 0], sizes = [1, 8, 8], strides = [1, 1, 1]} : vector<8x8x8xf32> to vector<1x8x8xf32>
    %88 = vector.shape_cast %87 : vector<1x8x8xf32> to vector<8x8xf32>
    %89 = tpu.concatenate %82, %84, %86, %88 in 1 : vector<8x8xf32>, vector<8x8xf32>, vector<8x8xf32>, vector<8x8xf32> -> vector<8x32xf32>
    %90 = vector.extract_strided_slice %80 {offsets = [4, 0, 0], sizes = [1, 8, 8], strides = [1, 1, 1]} : vector<8x8x8xf32> to vector<1x8x8xf32>
    %91 = vector.shape_cast %90 : vector<1x8x8xf32> to vector<8x8xf32>
    %92 = vector.extract_strided_slice %80 {offsets = [5, 0, 0], sizes = [1, 8, 8], strides = [1, 1, 1]} : vector<8x8x8xf32> to vector<1x8x8xf32>
    %93 = vector.shape_cast %92 : vector<1x8x8xf32> to vector<8x8xf32>
    %94 = vector.extract_strided_slice %80 {offsets = [6, 0, 0], sizes = [1, 8, 8], strides = [1, 1, 1]} : vector<8x8x8xf32> to vector<1x8x8xf32>
    %95 = vector.shape_cast %94 : vector<1x8x8xf32> to vector<8x8xf32>
    %96 = vector.extract_strided_slice %80 {offsets = [7, 0, 0], sizes = [1, 8, 8], strides = [1, 1, 1]} : vector<8x8x8xf32> to vector<1x8x8xf32>
    %97 = vector.shape_cast %96 : vector<1x8x8xf32> to vector<8x8xf32>
    %98 = tpu.concatenate %91, %93, %95, %97 in 1 : vector<8x8xf32>, vector<8x8xf32>, vector<8x8xf32>, vector<8x8xf32> -> vector<8x32xf32>
    %99 = tpu.concatenate %89, %98 in 0 : vector<8x32xf32>, vector<8x32xf32> -> vector<16x32xf32>
    %cst_13 = arith.constant dense<0.000000e+00> : vector<16x32xf32>
    %100 = tpu.matmul %99, %3, %cst_13 {dimension_numbers = #tpu.dot_dimension_numbers<[1], [0], [0], [1], [0, 0, 1, 1], [], []>} : vector<16x32xf32>, vector<32x32xf32>, vector<16x32xf32> -> vector<16x32xf32>
    %101 = vector.broadcast %7 : vector<1x32xf32> to vector<16x32xf32>
    %102 = arith.addf %100, %101 : vector<16x32xf32>
    %103 = arith.addf %0, %102 : vector<16x32xf32>
    %cst_14 = arith.constant dense<0.000000e+00> : vector<16xf32>
    %104 = vector.multi_reduction <add>, %103, %cst_14 [1] : vector<16x32xf32> to vector<16xf32>
    %105 = vector.shape_cast %104 : vector<16xf32> to vector<16x1xf32>
    %cst_15 = arith.constant 3.200000e+01 : f32
    %106 = vector.broadcast %cst_15 : f32 to vector<16x1xf32>
    %107 = arith.divf %105, %106 : vector<16x1xf32>
    %108 = vector.broadcast %107 : vector<16x1xf32> to vector<16x32xf32>
    %109 = arith.subf %103, %108 : vector<16x32xf32>
    %110 = arith.mulf %109, %109 : vector<16x32xf32>
    %cst_16 = arith.constant dense<0.000000e+00> : vector<16xf32>
    %111 = vector.multi_reduction <add>, %110, %cst_16 [1] : vector<16x32xf32> to vector<16xf32>
    %112 = vector.shape_cast %111 : vector<16xf32> to vector<16x1xf32>
    %cst_17 = arith.constant 3.200000e+01 : f32
    %113 = vector.broadcast %cst_17 : f32 to vector<16x1xf32>
    %114 = arith.divf %112, %113 : vector<16x1xf32>
    %cst_18 = arith.constant 9.99999974E-6 : f32
    %115 = vector.broadcast %cst_18 : f32 to vector<16x1xf32>
    %116 = arith.addf %114, %115 : vector<16x1xf32>
    %117 = math.rsqrt %116 : vector<16x1xf32>
    %118 = vector.broadcast %117 : vector<16x1xf32> to vector<16x32xf32>
    %119 = arith.mulf %109, %118 : vector<16x32xf32>
    %120 = vector.broadcast %8 : vector<1x32xf32> to vector<16x32xf32>
    %121 = arith.mulf %119, %120 : vector<16x32xf32>
    %122 = vector.broadcast %9 : vector<1x32xf32> to vector<16x32xf32>
    %123 = arith.addf %121, %122 : vector<16x32xf32>
    %cst_19 = arith.constant dense<0.000000e+00> : vector<16x64xf32>
    %124 = tpu.matmul %123, %4, %cst_19 {dimension_numbers = #tpu.dot_dimension_numbers<[1], [0], [0], [1], [0, 0, 1, 1], [], []>} : vector<16x32xf32>, vector<32x64xf32>, vector<16x64xf32> -> vector<16x64xf32>
    %125 = vector.broadcast %10 : vector<1x64xf32> to vector<16x64xf32>
    %126 = arith.addf %124, %125 : vector<16x64xf32>
    %cst_20 = arith.constant 0.000000e+00 : f32
    %127 = vector.broadcast %cst_20 : f32 to vector<16x64xf32>
    %128 = arith.maximumf %126, %127 : vector<16x64xf32>
    %cst_21 = arith.constant dense<0.000000e+00> : vector<16x32xf32>
    %129 = tpu.matmul %128, %5, %cst_21 {dimension_numbers = #tpu.dot_dimension_numbers<[1], [0], [0], [1], [0, 0, 1, 1], [], []>} : vector<16x64xf32>, vector<64x32xf32>, vector<16x32xf32> -> vector<16x32xf32>
    %130 = vector.broadcast %11 : vector<1x32xf32> to vector<16x32xf32>
    %131 = arith.addf %129, %130 : vector<16x32xf32>
    %132 = arith.addf %123, %131 : vector<16x32xf32>
    %cst_22 = arith.constant dense<0.000000e+00> : vector<16xf32>
    %133 = vector.multi_reduction <add>, %132, %cst_22 [1] : vector<16x32xf32> to vector<16xf32>
    %134 = vector.shape_cast %133 : vector<16xf32> to vector<16x1xf32>
    %cst_23 = arith.constant 3.200000e+01 : f32
    %135 = vector.broadcast %cst_23 : f32 to vector<16x1xf32>
    %136 = arith.divf %134, %135 : vector<16x1xf32>
    %137 = vector.broadcast %136 : vector<16x1xf32> to vector<16x32xf32>
    %138 = arith.subf %132, %137 : vector<16x32xf32>
    %139 = arith.mulf %138, %138 : vector<16x32xf32>
    %cst_24 = arith.constant dense<0.000000e+00> : vector<16xf32>
    %140 = vector.multi_reduction <add>, %139, %cst_24 [1] : vector<16x32xf32> to vector<16xf32>
    %141 = vector.shape_cast %140 : vector<16xf32> to vector<16x1xf32>
    %cst_25 = arith.constant 3.200000e+01 : f32
    %142 = vector.broadcast %cst_25 : f32 to vector<16x1xf32>
    %143 = arith.divf %141, %142 : vector<16x1xf32>
    %cst_26 = arith.constant 9.99999974E-6 : f32
    %144 = vector.broadcast %cst_26 : f32 to vector<16x1xf32>
    %145 = arith.addf %143, %144 : vector<16x1xf32>
    %146 = math.rsqrt %145 : vector<16x1xf32>
    %147 = vector.broadcast %146 : vector<16x1xf32> to vector<16x32xf32>
    %148 = arith.mulf %138, %147 : vector<16x32xf32>
    %149 = vector.broadcast %12 : vector<1x32xf32> to vector<16x32xf32>
    %150 = arith.mulf %148, %149 : vector<16x32xf32>
    %151 = vector.broadcast %13 : vector<1x32xf32> to vector<16x32xf32>
    %152 = arith.addf %150, %151 : vector<16x32xf32>
    %c0_27 = arith.constant 0 : index
    %c0_28 = arith.constant 0 : index
    %153 = vector.load %arg4[%c0_27, %c0_28] : memref<16x32xf32, #tpu.memory_space<vmem>>, vector<16x32xf32>
    tpu.vector_store %arg4[%c0_27, %c0_28], %152 {strides = array<i32>} : memref<16x32xf32, #tpu.memory_space<vmem>>, vector<16x32xf32>,
    return
  }
  func.func @transform_0(%arg0: i32) -> (i32, i32) {
    %c0_i32 = arith.constant 0 : i32
    %c0_i32_0 = arith.constant 0 : i32
    %c0_i32_1 = arith.constant 0 : i32
    return %c0_i32, %c0_i32_0 : i32, i32
  }
  func.func @transform_1(%arg0: i32) -> (i32, i32) {
    %c0_i32 = arith.constant 0 : i32
    %c0_i32_0 = arith.constant 0 : i32
    %c0_i32_1 = arith.constant 0 : i32
    return %c0_i32, %c0_i32_0 : i32, i32
  }
  func.func @transform_2(%arg0: i32) -> (i32, i32) {
    %c0_i32 = arith.constant 0 : i32
    %c0_i32_0 = arith.constant 0 : i32
    %c0_i32_1 = arith.constant 0 : i32
    return %c0_i32, %c0_i32_0 : i32, i32
  }
  func.func @transform_3(%arg0: i32) -> (i32, i32) {
    %c0_i32 = arith.constant 0 : i32
    %c0_i32_0 = arith.constant 0 : i32
    %c0_i32_1 = arith.constant 0 : i32
    return %c0_i32, %c0_i32_0 : i32, i32
  }
}

</mosaic_0001>

<bundles_post_ra>
// kernel: encoder_layer.1
= control target key start
LH: loop header
LB: loop body
LE: loop exit
PB: predicated region body
PF: predicated region fallthrough
CT: control target
= control target key end

     0   :  { %s1425_s0 = inlined_call_operand.vmem [shape: f32[16,32], index: 0, kind: input, shape index: {}]   ;;  %s1426_s1 = inlined_call_operand.vmem [shape: f32[64,512], index: 1, kind: input, shape index: {}]   ;;  %s1427_s2 = inlined_call_operand.vmem [shape: f32[8,128], index: 2, kind: input, shape index: {}]   ;;  %s1428_s3 = inlined_call_operand.hbm [shape: f32[16,32], index: 3, kind: output, shape index: {}]  }
   0x1   :  { %v21_v0 = vld [vmem:[%s1426_s1 + $0x60] sm:$0xff] }
   0x2   :  { %v20_v1 = vld [vmem:[%s1426_s1 + $0x40] sm:$0xff]  ;;  %58 = vmatpush.msra.mxu0 %v21_v0 }
   0x3   :  { %v19_v2 = vld [vmem:[%s1426_s1 + $0x20] sm:$0xff] }
   0x4   :  { %8 = vsyncpa [#allocation3], 0  ;;  %59 = vmatpush.msra.mxu0 %v20_v1  ;;  %v18_v3 = vld [vmem:[%s1426_s1] sm:$0xff]  ;;  %vm39_vm0 = vcmask 261120   ;;  %v1135_v5 = vld [vmem:[%s1425_s0 + $0x8] sm:$0xff]  ;;  %s1082_s26 = smov 104  }
   0x5   :  { %v1128_v4 = vld [vmem:[%s1425_s0] sm:$0xff]  ;;  %s1083_s27 = smov 120   ;;  %s1084_s0 = smov 112   ;;  %vm85_vm1 = vcmask 64512  }
   0x6   :  { %60 = vmatpush.msra.mxu0 %v19_v2  ;;  %v1142_v6 = vld [vmem:[%s1427_s2] sm:$0xff]  ;;  %s1085_s2 = smov 96   ;;  %s1086_s28 = smov 64  }
   0x7   :  { %v38_v7 = vperm.slane %v1142_v6, 0  ;;  %s1087_s29 = smov 8   ;;  %s1088_s30 = smov 24  }
   0x8   :  { %61 = vmatpush.msra.mxu0 %v18_v3  ;;  %s1089_s4 = smov 16   ;;  %s944_s10 = sshll.u32 %s1428_s3, 4  ;;  %s945_s10 = int_to_ptr.hbm [resolvable:$true] %s944_s10 }
   0x9   :  { %956 = vmatmul.msk.f32.vlgmr.msra.gmra.mxu0 %vm39_vm0, %v1128_v4  ;;  %s1091_s11 = smov [#allocation2]   ;;  %s1092_s13 = smov 128  }
   0xa   :  { %s942_s12 = sshll.u32 %s1091_s11, 4  ;;  %s943_s12 = int_to_ptr.vmem [resolvable:$true] %s942_s12 }
  0x11   :  { %957 = vmatmul.msk.f32.gmra.mxu0 %vm39_vm0, %v1135_v5 }
  0x86   :  { %v63_v8 = vpop.f32.mrf.mxu0 }
  0x87   :  { %v1145_v9 = vadd.f32 %v63_v8, %v38_v7 }
  0x89   :  { %74 = vrot.lane.b32.xlu1 %v1145_v9, %s1082_s26  ;;  %70 = vrot.lane.b32.xlu0 %v1145_v9, %s1083_s27 }
  0x8e   :  { %v66_v10 = vpop.f32.mrf.mxu0 }
  0x8f   :  { %v1149_v11 = vadd.f32 %v66_v10, %v38_v7 }
  0x91   :  { %81 = vrot.lane.b32.xlu1 %v1149_v11, %s1082_s26  ;;  %72 = vrot.lane.b32.xlu0 %v1145_v9, %s1084_s0 }
  0x92   :  { %77 = vrot.lane.b32.xlu2 %v1149_v11, %s1083_s27 }
  0x99   :  { %83 = vrot.lane.b32.xlu0 %v1145_v9, %s1085_s2 }
  0x9a   :  { %79 = vrot.lane.b32.xlu2 %v1149_v11, %s1084_s0 }
  0xa2   :  { %188 = vrot.lane.b32.xlu2 %v1149_v11, %s1085_s2 }
  0xec   :  { %v1162_v14 = vpop.permute.xlu2 %77 }
  0xf4   :  { %v1171_v17 = vpop.permute.xlu2 %79 }
  0xfb   :  { %v1157_v12 = vpop.permute.xlu1 %74  ;;  %v1159_v13 = vpop.permute.xlu0 %70 }
  0xfc   :  { %110 = vrot.lane.b32.xlu1 %v1159_v13, %s1085_s2  ;;  %v189_v19 = vpop.permute.xlu2 %188 }
 0x103   :  { %v1164_v15 = vpop.permute.xlu0 %72  ;;  %v1166_v16 = vpop.permute.xlu1 %81 }
 0x104   :  { %162 = vrot.lane.b32.xlu1 %v1157_v12, %s1085_s2  ;;  %136 = vrot.lane.b32.xlu0 %v1164_v15, %s1085_s2 }
 0x105   :  { %266 = vrot.lane.b32.xlu2 %v1166_v16, %s1085_s2 }
 0x10b   :  { %v84_v18 = vpop.permute.xlu0 %83 }
 0x10c   :  { %240 = vrot.lane.b32.xlu1 %v1171_v17, %s1085_s2  ;;  %214 = vrot.lane.b32.xlu0 %v1162_v14, %s1085_s2 }
 0x10d   :  { %958 = vmatpush.xpose.msk.msra.mxu2 %vm85_vm1, %v84_v18 }
 0x110   :  { %959 = vmatmul.msk.f32.vlgmr.msra.gmra.mxu2 %vm85_vm1, %v1145_v9 }
 0x15f   :  { %v267_v21 = vpop.permute.xlu2 %266 }
 0x16e   :  { %v111_v20 = vpop.permute.xlu1 %110 }
 0x16f   :  { %960 = vmatpush.xpose.msk.msrb.mxu2 %vm85_vm1, %v111_v20 }
 0x172   :  { %961 = vmatmul.msk.f32.vlgmr.msrb.gmra.mxu2 %vm85_vm1, %v1159_v13 }
 0x173   :  { %966 = vmatpush.xpose.msk.msra.mxu2 %vm85_vm1, %v189_v19 }
 0x176   :  { %v163_v22 = vpop.permute.xlu1 %162  ;;  %v137_v23 = vpop.permute.xlu0 %136 }
 0x177   :  { %972 = vmatpush.xpose.msk.msrb.mxu2 %vm85_vm1, %v267_v21  ;;  %962 = vmatpush.xpose.msk.msra.mxu3 %vm85_vm1, %v137_v23 }
 0x178   :  { %964 = vmatpush.xpose.msk.msra.mxu1 %vm85_vm1, %v163_v22 }
 0x17a   :  { %963 = vmatmul.msk.f32.vlgmr.msra.gmra.mxu3 %vm85_vm1, %v1164_v15  ;;  %967 = vmatmul.msk.f32.vlgmr.msra.gmra.mxu2 %vm85_vm1, %v1149_v11 }
 0x17b   :  { %965 = vmatmul.msk.f32.vlgmr.msra.gmra.mxu1 %vm85_vm1, %v1157_v12 }
 0x17e   :  { %v241_v24 = vpop.permute.xlu1 %240  ;;  %v215_v25 = vpop.permute.xlu0 %214 }
 0x17f   :  { %968 = vmatpush.xpose.msk.msrb.mxu3 %vm85_vm1, %v215_v25  ;;  %970 = vmatpush.xpose.msk.msrb.mxu1 %vm85_vm1, %v241_v24 }
 0x182   :  { %969 = vmatmul.msk.f32.vlgmr.msrb.gmra.mxu3 %vm85_vm1, %v1162_v14  ;;  %973 = vmatmul.msk.f32.vlgmr.msrb.gmra.mxu2 %vm85_vm1, %v1166_v16 }
 0x183   :  { %971 = vmatmul.msk.f32.vlgmr.msrb.gmra.mxu1 %vm85_vm1, %v1171_v17 }
 0x193   :  { %v107_v26 = vpop.f32.mrf.mxu2 }
 0x194   :  { %v1203_v40 = vmul.f32 0.35355338, %v107_v26 }
 0x196   :  { %v300_v43 = vsel %vm85_vm1, %v1203_v40, -inf }
 0x1f5   :  { %v133_v27 = vpop.f32.mrf.mxu2 }
 0x1f6   :  { %v293_v28 = vmul.f32 0.35355338, %v133_v27  ;;  %v999_v27 = vpack.i.bf16 %v1159_v13, %v1157_v12 }
 0x1f8   :  { %v185_v29 = vpop.f32.mrf.mxu1  ;;  %v303_v31 = vsel %vm85_vm1, %v293_v28, -inf }
 0x1f9   :  { %v295_v30 = vmul.f32 0.35355338, %v185_v29  ;;  %304 = vmax.xlane.f32.xlu0 %v303_v31  ;;  %v1004_v29 = vpack.i.bf16 %v1166_v16, %v1164_v15 }
 0x1fb   :  { %v309_v32 = vsel %vm85_vm1, %v295_v30, -inf }
 0x1fc   :  { %310 = vmax.xlane.f32.xlu2 %v309_v32 }
 0x1fd   :  { %v159_v33 = vpop.f32.mrf.mxu3  ;;  %v211_v35 = vpop.f32.mrf.mxu2 }
 0x1fe   :  { %v294_v34 = vmul.f32 0.35355338, %v159_v33  ;;  %v296_v48 = vmul.f32 0.35355338, %v211_v35 }
 0x200   :  { %v263_v36 = vpop.f32.mrf.mxu1  ;;  %v306_v38 = vsel %vm85_vm1, %v294_v34, -inf  ;;  %v312_v49 = vsel %vm85_vm1, %v296_v48, -inf }
 0x201   :  { %v298_v37 = vmul.f32 0.35355338, %v263_v36  ;;  %307 = vmax.xlane.f32.xlu1 %v306_v38 }
 0x203   :  { %v318_v39 = vsel %vm85_vm1, %v298_v37, -inf }
 0x204   :  { %319 = vmax.xlane.f32.xlu0 %v318_v39 }
 0x205   :  { %v289_v41 = vpop.f32.mrf.mxu2  ;;  %v237_v45 = vpop.f32.mrf.mxu3 }
 0x206   :  { %v299_v42 = vmul.f32 0.35355338, %v289_v41  ;;  %v297_v46 = vmul.f32 0.35355338, %v237_v45 }
 0x208   :  { %v321_v44 = vsel %vm85_vm1, %v299_v42, -inf  ;;  %v315_v47 = vsel %vm85_vm1, %v297_v46, -inf }
 0x209   :  { %301 = vmax.xlane.f32.xlu1 %v300_v43  ;;  %322 = vmax.xlane.f32.xlu2 %v321_v44 }
 0x211   :  { %316 = vmax.xlane.f32.xlu2 %v315_v47 }
 0x219   :  { %313 = vmax.xlane.f32.xlu2 %v312_v49 }
 0x26c   :  { %v305_v50 = vpop.xlane.xlu0 %304 }
 0x26d   :  { %v325_v51 = vsub.f32 %v293_v28, %v305_v50  ;;  %v1009_v28 = vpack.i.bf16 %v1171_v17, %v1162_v14 }
 0x26f   :  { %v311_v52 = vpop.xlane.xlu2 %310  ;;  %v334_v53 = vmul.f32 1.442695, %v325_v51 }
 0x270   :  { %v327_v54 = vsub.f32 %v295_v30, %v311_v52 }
 0x271   :  { %1014 = vpow2.f32 %v334_v53 }
 0x272   :  { %v338_v55 = vmul.f32 1.442695, %v327_v54 }
 0x274   :  { %1016 = vpow2.f32 %v338_v55  ;;  %v308_v56 = vpop.xlane.xlu1 %307 }
 0x275   :  { %v326_v57 = vsub.f32 %v294_v34, %v308_v56 }
 0x277   :  { %v320_v58 = vpop.xlane.xlu0 %319  ;;  %v1210_v59 = vpop.eup %1014  ;;  %v336_v60 = vmul.f32 1.442695, %v326_v57 }
 0x278   :  { %v330_v61 = vsub.f32 %v298_v37, %v320_v58  ;;  %v351_v62 = vsel %vm85_vm1, %v1210_v59, 0.0 }
 0x279   :  { %1018 = vpow2.f32 %v336_v60  ;;  %352 = vadd.xlane.f32.xlu1 %v351_v62 }
 0x27a   :  { %v1214_v63 = vpop.eup %1016  ;;  %v344_v1 = vmul.f32 1.442695, %v330_v61 }
 0x27b   :  { %v357_v0 = vsel %vm85_vm1, %v1214_v63, 0.0 }
 0x27c   :  { %358 = vadd.xlane.f32.xlu0 %v357_v0  ;;  %v323_v2 = vpop.xlane.xlu2 %322  ;;  %1020 = vpow2.f32 %v344_v1  ;;  %v302_v30 = vpop.xlane.xlu1 %301 }
 0x27d   :  { %v331_v3 = vsub.f32 %v299_v42, %v323_v2  ;;  %v324_v31 = vsub.f32 %v1203_v40, %v302_v30 }
 0x27f   :  { %v1218_v7 = vpop.eup %1018  ;;  %v346_v8 = vmul.f32 1.442695, %v331_v3  ;;  %v332_v32 = vmul.f32 1.442695, %v324_v31 }
 0x280   :  { %v354_v10 = vsel %vm85_vm1, %v1218_v7, 0.0 }
 0x281   :  { %355 = vadd.xlane.f32.xlu2 %v354_v10  ;;  %1022 = vpow2.f32 %v346_v8 }
 0x282   :  { %v1222_v18 = vpop.eup %1020 }
 0x283   :  { %v366_v23 = vsel %vm85_vm1, %v1222_v18, 0.0 }
 0x284   :  { %v317_v19 = vpop.xlane.xlu2 %316 }
 0x285   :  { %v329_v20 = vsub.f32 %v297_v46, %v317_v19 }
 0x287   :  { %v1224_v21 = vpop.eup %1022  ;;  %v342_v22 = vmul.f32 1.442695, %v329_v20 }
 0x288   :  { %v369_v24 = vsel %vm85_vm1, %v1224_v21, 0.0 }
 0x289   :  { %367 = vadd.xlane.f32.xlu2 %v366_v23  ;;  %1024 = vpow2.f32 %v342_v22  ;;  %370 = vadd.xlane.f32.xlu0 %v369_v24 }
 0x28a   :  { %1026 = vpow2.f32 %v332_v32 }
 0x28c   :  { %v314_v12 = vpop.xlane.xlu2 %313 }
 0x28d   :  { %v328_v13 = vsub.f32 %v296_v48, %v314_v12 }
 0x28f   :  { %v1230_v25 = vpop.eup %1024  ;;  %v340_v34 = vmul.f32 1.442695, %v328_v13 }
 0x290   :  { %v363_v26 = vsel %vm85_vm1, %v1230_v25, 0.0  ;;  %v1243_v33 = vpop.eup %1026 }
 0x291   :  { %364 = vadd.xlane.f32.xlu1 %v363_v26  ;;  %v348_v14 = vsel %vm85_vm1, %v1243_v33, 0.0  ;;  %1028 = vpow2.f32 %v340_v34 }
 0x297   :  { %v1247_v15 = vpop.eup %1028 }
 0x29d   :  { %1000 = vrot.lane.b32.xlu0 %v999_v27, %s1086_s28 }
 0x2a1   :  { %1010 = vrot.lane.b32.xlu2 %v1009_v28, %s1086_s28 }
 0x2a9   :  { %492 = vrot.lane.b32.xlu2 %v1145_v9, %s1086_s28  ;;  %v360_v9 = vsel %vm85_vm1, %v1247_v15, 0.0 }
 0x2aa   :  { %1005 = vrot.lane.b32.xlu1 %v1004_v29, %s1086_s28 }
 0x2b1   :  { %596 = vrot.lane.b32.xlu2 %v1149_v11, %s1086_s28 }
 0x2c7   :  { %349 = vadd.xlane.f32.xlu0 %v348_v14 }
 0x2d4   :  { %361 = vadd.xlane.f32.xlu1 %v360_v9 }
 0x2ec   :  { %v353_v11 = vpop.xlane.xlu1 %352 }
 0x2ed   :  { %1030 = vrcp.f32 %v353_v11  ;;  %vm392_vm4 = vweird.f32 %v353_v11  ;;  %v398_v53 = vand.u32 2147483648, %v353_v11  ;;  %v396_v56 = vand.u32 2147483647, %v353_v11 }
 0x2ef   :  { %v359_v16 = vpop.xlane.xlu0 %358  ;;  %v399_v3 = vor.u32 1.1754944e-38, %v398_v53  ;;  %vm397_vm8 = vcmp.eq.f32.partialorder %v396_v56, 8.507059e+37 }
 0x2f0   :  { %1032 = vrcp.f32 %v359_v16  ;;  %v428_v54 = vand.u32 2147483648, %v359_v16  ;;  %vm422_vm6 = vweird.f32 %v359_v16  ;;  %v426_v57 = vand.u32 2147483647, %v359_v16 }
 0x2f2   :  { %v429_v8 = vor.u32 1.1754944e-38, %v428_v54  ;;  %vm427_vm9 = vcmp.eq.f32.partialorder %v426_v57, 8.507059e+37 }
 0x2f3   :  { %v1031_v35 = vpop.eup %1030 }
 0x2f4   :  { %v1251_v17 = vpop.xlane.xlu2 %355  ;;  %v388_v37 = vmul.f32 %v1031_v35, %v353_v11  ;;  %vm393_vm2 = vweird.f32 %v1031_v35 }
 0x2f5   :  { %1034 = vrcp.f32 %v1251_v17  ;;  %vm1273_vm5 = vmor %vm392_vm4, %vm393_vm2  ;;  %vm407_vm15 = vweird.f32 %v1251_v17 }
 0x2f6   :  { %v1033_v36 = vpop.eup %1032  ;;  %v389_v41 = vsub.f32 1.0, %v388_v37  ;;  %v413_v37 = vand.u32 2147483648, %v1251_v17 }
 0x2f7   :  { %v418_v38 = vmul.f32 %v1033_v36, %v359_v16  ;;  %vm423_vm3 = vweird.f32 %v1033_v36 }
 0x2f8   :  { %v390_v44 = vmul.f32 %v1031_v35, %v389_v41  ;;  %vm424_vm7 = vmor %vm422_vm6, %vm423_vm3  ;;  %v411_v41 = vand.u32 2147483647, %v1251_v17 }
 0x2f9   :  { %v419_v42 = vsub.f32 1.0, %v418_v38 }
 0x2fa   :  { %v391_v49 = vadd.f32 %v1031_v35, %v390_v44  ;;  %vm412_vm6 = vcmp.eq.f32.partialorder %v411_v41, 8.507059e+37 }
 0x2fb   :  { %v1259_v43 = vpop.eup %1034  ;;  %v420_v45 = vmul.f32 %v1033_v36, %v419_v42 }
 0x2fc   :  { %v1253_v39 = vpop.xlane.xlu2 %367  ;;  %v1255_v40 = vpop.xlane.xlu0 %370  ;;  %v403_v51 = vmul.f32 %v1259_v43, %v1251_v17  ;;  %v395_v1 = vsel %vm1273_vm5, %v1031_v35, %v391_v49  ;;  %vm408_vm12 = vweird.f32 %v1259_v43 }
 0x2fd   :  { %1036 = vrcp.f32 %v1255_v40  ;;  %v421_v50 = vadd.f32 %v1033_v36, %v420_v45  ;;  %v400_v22 = vsel %vm397_vm8, %v399_v3, %v395_v1  ;;  %v488_v38 = vand.u32 2147483648, %v1255_v40  ;;  %vm409_vm3 = vmor %vm407_vm15, %vm408_vm12 }
 0x2fe   :  { %v404_v61 = vsub.f32 1.0, %v403_v51  ;;  %v401_v12 = vmul.f32 %v1210_v59, %v400_v22  ;;  %vm482_vm4 = vweird.f32 %v1255_v40  ;;  %v486_v42 = vand.u32 2147483647, %v1255_v40 }
 0x2ff   :  { %v425_v60 = vsel %vm424_vm7, %v1033_v36, %v421_v50  ;;  %v414_v50 = vor.u32 1.1754944e-38, %v413_v37  ;;  %v489_v51 = vor.u32 1.1754944e-38, %v488_v38 }
 0x300   :  { %v430_v19 = vsel %vm427_vm9, %v429_v8, %v425_v60  ;;  %v405_v23 = vmul.f32 %v1259_v43, %v404_v61  ;;  %vm487_vm7 = vcmp.eq.f32.partialorder %v486_v42, 8.507059e+37  ;;  %vm467_vm9 = vweird.f32 %v1253_v39 }
 0x301   :  { %v431_v13 = vmul.f32 %v1214_v63, %v430_v19 }
 0x302   :  { %v406_v9 = vadd.f32 %v1259_v43, %v405_v23 }
 0x303   :  { %v1263_v47 = vpop.eup %1036 }
 0x304   :  { %v1261_v46 = vpop.permute.xlu2 %1010  ;;  %v1265_v48 = vpop.xlane.xlu1 %364  ;;  %v478_v52 = vmul.f32 %v1263_v47, %v1255_v40  ;;  %vm483_vm13 = vweird.f32 %v1263_v47  ;;  %v410_v45 = vsel %vm409_vm3, %v1259_v43, %v406_v9  ;;  %v473_v43 = vand.u32 2147483648, %v1253_v39 }
 0x305   :  { %1038 = vrcp.f32 %v1265_v48  ;;  %v458_v27 = vand.u32 2147483648, %v1265_v48  ;;  %v456_v32 = vand.u32 2147483647, %v1265_v48  ;;  %vm452_vm11 = vweird.f32 %v1265_v48  ;;  %vm484_vm5 = vmor %vm482_vm4, %vm483_vm13 }
 0x306   :  { %1040 = vrcp.f32 %v1253_v39  ;;  %v479_v62 = vsub.f32 1.0, %v478_v52  ;;  %v1012_v14 = vunpack.i.l.bf16 %v1261_v46  ;;  %v415_v17 = vsel %vm412_vm6, %v414_v50, %v410_v45 }
 0x307   :  { %v459_v36 = vor.u32 1.1754944e-38, %v458_v27  ;;  %vm457_vm2 = vcmp.eq.f32.partialorder %v456_v32, 8.507059e+37  ;;  %v474_v61 = vor.u32 1.1754944e-38, %v473_v43  ;;  %vm713_vm6 = vcmask 130048  }
 0x308   :  { %v480_v26 = vmul.f32 %v1263_v47, %v479_v62 }
 0x30a   :  { %v481_v16 = vadd.f32 %v1263_v47, %v480_v26 }
 0x30b   :  { %v1039_v58 = vpop.eup %1038 }
 0x30c   :  { %v493_v0 = vpop.permute.xlu2 %492  ;;  %v1279_v2 = vpop.eup %1040  ;;  %v448_v10 = vmul.f32 %v1039_v58, %v1265_v48  ;;  %vm453_vm10 = vweird.f32 %v1039_v58  ;;  %v485_v49 = vsel %vm484_vm5, %v1263_v47, %v481_v16  ;;  %v471_v47 = vand.u32 2147483647, %v1253_v39  ;;  %v23_v16 = vld [vmem:[%s1426_s1 + $0x28] sm:$0xff] }
 0x30d   :  { %513 = vmatpush.msra.mxu3 %v493_v0  ;;  %v463_v24 = vmul.f32 %v1279_v2, %v1253_v39  ;;  %vm1295_vm14 = vmor %vm452_vm11, %vm453_vm10  ;;  %v490_v53 = vsel %vm487_vm7, %v489_v51, %v485_v49  ;;  %vm468_vm8 = vweird.f32 %v1279_v2  ;;  %vm715_vm7 = vcmask 195584  }
 0x30e   :  { %v449_v20 = vsub.f32 1.0, %v448_v10  ;;  %v491_v57 = vmul.f32 %v1224_v21, %v490_v53  ;;  %vm469_vm10 = vmor %vm467_vm9, %vm468_vm8  ;;  %vm472_vm11 = vcmp.eq.f32.partialorder %v471_v47, 8.507059e+37 }
 0x30f   :  { %v1001_v28 = vpop.permute.xlu0 %1000  ;;  %v464_v63 = vsub.f32 1.0, %v463_v24 }
 0x310   :  { %v450_v29 = vmul.f32 %v1039_v58, %v449_v20  ;;  %v1002_v30 = vunpack.i.l.bf16 %v1001_v28  ;;  %v1003_v31 = vunpack.i.h.bf16 %v1001_v28 }
 0x311   :  { %v465_v48 = vmul.f32 %v1279_v2, %v464_v63  ;;  %v24_v63 = vld [vmem:[%s1426_s1 + $0x48] sm:$0xff] }
 0x312   :  { %v451_v34 = vadd.f32 %v1039_v58, %v450_v29  ;;  %539 = vmatpush.msrb.mxu0 %v1003_v31  ;;  %591 = vmatpush.msra.mxu2 %v1002_v30 }
 0x313   :  { %975 = vmatmul.msk.f32.vlgmr.msrb.gmra.mxu0 %vm85_vm1, %v401_v12  ;;  %977 = vmatmul.msk.f32.vlgmr.msra.gmra.mxu2 %vm85_vm1, %v431_v13  ;;  %v466_v40 = vadd.f32 %v1279_v2, %v465_v48 }
 0x314   :  { %v597_v59 = vpop.permute.xlu2 %596  ;;  %v455_v35 = vsel %vm1295_vm14, %v1039_v58, %v451_v34  ;;  %643 = vmatpush.msra.mxu0 %v1012_v14  ;;  %v1013_v58 = vunpack.i.h.bf16 %v1261_v46 }
 0x315   :  { %617 = vmatpush.msrb.mxu3 %v597_v59  ;;  %v460_v44 = vsel %vm457_vm2, %v459_v36, %v455_v35  ;;  %v470_v60 = vsel %vm469_vm10, %v1279_v2, %v466_v40  ;;  %v22_v35 = vld [vmem:[%s1426_s1 + $0x8] sm:$0xff]  ;;  %v732_v40 = vperm.slane %v1142_v6, 1 }
 0x316   :  { %v461_v52 = vmul.f32 %v1230_v25, %v460_v44  ;;  %v416_v25 = vmul.f32 %v1218_v7, %v415_v17  ;;  %v475_v62 = vsel %vm472_vm11, %v474_v61, %v470_v60  ;;  %v1090_v60 = vmov 32.0  }
 0x317   :  { %v476_v39 = vmul.f32 %v1222_v18, %v475_v62 }
 0x31b   :  { %979 = vmatmul.msk.f32.vlgmr.msra.gmra.mxu0 %vm85_vm1, %v461_v52 }
 0x31c   :  { %v1006_v54 = vpop.permute.xlu1 %1005 }
 0x31d   :  { %v1008_v55 = vunpack.i.h.bf16 %v1006_v54  ;;  %v1007_v56 = vunpack.i.l.bf16 %v1006_v54 }
 0x31f   :  { %565 = vmatpush.msra.mxu1 %v1007_v56  ;;  %695 = vmatpush.msrb.mxu2 %v1008_v55 }
 0x320   :  { %976 = vmatmul.msk.f32.vlgmr.msra.gmra.mxu1 %vm85_vm1, %v416_v25  ;;  %981 = vmatmul.msk.f32.vlgmr.msrb.gmra.mxu2 %vm85_vm1, %v491_v57 }
 0x321   :  { %669 = vmatpush.msrb.mxu1 %v1013_v58 }
 0x328   :  { %980 = vmatmul.msk.f32.vlgmr.msrb.gmra.mxu1 %vm85_vm1, %v476_v39 }
 0x33a   :  { %v350_v7 = vpop.xlane.xlu0 %349 }
 0x33b   :  { %1042 = vrcp.f32 %v350_v7  ;;  %v383_v1 = vand.u32 2147483648, %v350_v7  ;;  %v381_v2 = vand.u32 2147483647, %v350_v7  ;;  %vm377_vm13 = vweird.f32 %v350_v7 }
 0x33d   :  { %v384_v19 = vor.u32 1.1754944e-38, %v383_v1  ;;  %vm382_vm15 = vcmp.eq.f32.partialorder %v381_v2, 8.507059e+37 }
 0x341   :  { %v1043_v21 = vpop.eup %1042 }
 0x342   :  { %v373_v46 = vmul.f32 %v1043_v21, %v350_v7  ;;  %vm378_vm12 = vweird.f32 %v1043_v21 }
 0x343   :  { %vm379_vm14 = vmor %vm377_vm13, %vm378_vm12 }
 0x344   :  { %v374_v0 = vsub.f32 1.0, %v373_v46 }
 0x346   :  { %v375_v3 = vmul.f32 %v1043_v21, %v374_v0 }
 0x347   :  { %v362_v8 = vpop.xlane.xlu1 %361 }
 0x348   :  { %v376_v10 = vadd.f32 %v1043_v21, %v375_v3  ;;  %1044 = vrcp.f32 %v362_v8  ;;  %v443_v27 = vand.u32 2147483648, %v362_v8  ;;  %v441_v29 = vand.u32 2147483647, %v362_v8 }
 0x349   :  { %vm437_vm3 = vweird.f32 %v362_v8  ;;  %1046 = vrcp.f32 %v1090_v60 }
 0x34a   :  { %v380_v20 = vsel %vm379_vm14, %v1043_v21, %v376_v10  ;;  %v444_v31 = vor.u32 1.1754944e-38, %v443_v27  ;;  %vm442_vm5 = vcmp.eq.f32.partialorder %v441_v29, 8.507059e+37  ;;  %vm854_vm14 = vcmask 523264  }
 0x34b   :  { %v385_v18 = vsel %vm382_vm15, %v384_v19, %v380_v20 }
 0x34c   :  { %v386_v22 = vmul.f32 %v1243_v33, %v385_v18  ;;  %v29_v18 = vld [vmem:[%s1426_s1 + $0x70] sm:$0xff] }
 0x34d   :  { %840 = vmatpush.msrb.mxu0 %v29_v18 }
 0x34e   :  { %v1045_v23 = vpop.eup %1044  ;;  %974 = vmatmul.msk.f32.vlgmr.msra.gmra.mxu3 %vm85_vm1, %v386_v22  ;;  %v28_v22 = vld [vmem:[%s1426_s1 + $0x50] sm:$0xff] }
 0x34f   :  { %v433_v24 = vmul.f32 %v1045_v23, %v362_v8  ;;  %vm438_vm2 = vweird.f32 %v1045_v23  ;;  %v1047_v61 = vpop.eup %1046  ;;  %841 = vmatpush.msrb.mxu0 %v28_v22 }
 0x350   :  { %vm439_vm4 = vmor %vm437_vm3, %vm438_vm2  ;;  %v771_v62 = vmul.f32 32.0, %v1047_v61 }
 0x351   :  { %v434_v26 = vsub.f32 1.0, %v433_v24  ;;  %v26_v24 = vld [vmem:[%s1426_s1 + $0x10] sm:$0xff] }
 0x352   :  { %v772_v39 = vsub.f32 1.0, %v771_v62 }
 0x353   :  { %v435_v28 = vmul.f32 %v1045_v23, %v434_v26 }
 0x354   :  { %v773_v7 = vmul.f32 %v1047_v61, %v772_v39 }
 0x355   :  { %v436_v30 = vadd.f32 %v1045_v23, %v435_v28 }
 0x356   :  { %v774_v21 = vadd.f32 %v1047_v61, %v773_v7 }
 0x357   :  { %v440_v32 = vsel %vm439_vm4, %v1045_v23, %v436_v30  ;;  %v27_v23 = vld [vmem:[%s1426_s1 + $0x30] sm:$0xff] }
 0x358   :  { %v445_v12 = vsel %vm442_vm5, %v444_v31, %v440_v32  ;;  %842 = vmatpush.msrb.mxu0 %v27_v23  ;;  %v37_v31 = vld [vmem:[%s1426_s1 + $0xf8] sm:$0xff] }
 0x359   :  { %v446_v13 = vmul.f32 %v1247_v15, %v445_v12  ;;  %v25_v15 = vld [vmem:[%s1426_s1 + $0x68] sm:$0xff]  ;;  %v36_v32 = vld [vmem:[%s1426_s1 + $0xd8] sm:$0xff]  ;;  %869 = vmatpush.msra.mxu1 %v37_v31 }
 0x35a   :  { %751 = vmatpush.msra.mxu3 %v25_v15  ;;  %843 = vmatpush.msrb.mxu0 %v26_v24  ;;  %v33_v15 = vld [vmem:[%s1426_s1 + $0x78] sm:$0xff] }
 0x35b   :  { %978 = vmatmul.msk.f32.vlgmr.msrb.gmra.mxu3 %vm85_vm1, %v446_v13  ;;  %v35_v13 = vld [vmem:[%s1426_s1 + $0xb8] sm:$0xff]  ;;  %870 = vmatpush.msra.mxu1 %v36_v32 }
 0x35c   :  { %752 = vmatpush.msra.mxu3 %v24_v63 }
 0x35d   :  { %871 = vmatpush.msra.mxu1 %v35_v13 }
 0x35e   :  { %753 = vmatpush.msra.mxu3 %v23_v16  ;;  %v815_v16 = vperm.slane %v1142_v6, 2 }
 0x360   :  { %754 = vmatpush.msra.mxu3 %v22_v35 }
 0x390   :  { %v541_v33 = vpop.f32.mrf.mxu0 }
 0x391   :  { %701 = vrot.lane.b32.xlu2 %v541_v33, %s1087_s29 }
 0x396   :  { %v593_v34 = vpop.f32.mrf.mxu2 }
 0x397   :  { %709 = vrot.lane.b32.xlu0 %v593_v34, %s1088_s30 }
 0x398   :  { %v645_v9 = vpop.f32.mrf.mxu0 }
 0x39d   :  { %v567_v14 = vpop.f32.mrf.mxu1 }
 0x39e   :  { %705 = vrot.lane.b32.xlu2 %v567_v14, %s1089_s4 }
 0x3a3   :  { %v697_v59 = vpop.f32.mrf.mxu2 }
 0x3a5   :  { %v671_v11 = vpop.f32.mrf.mxu1 }
 0x3a6   :  { %722 = vrot.lane.b32.xlu1 %v671_v11, %s1089_s4  ;;  %718 = vrot.lane.b32.xlu2 %v645_v9, %s1087_s29  ;;  %v34_v9 = vld [vmem:[%s1426_s1 + $0x98] sm:$0xff] }
 0x3a7   :  { %872 = vmatpush.msra.mxu1 %v34_v9  ;;  %v930_v9 = vperm.slane %v1142_v6, 6 }
 0x3a9   :  { %873 = vmatpush.msra.mxu1 %v33_v15  ;;  %v933_v15 = vperm.slane %v1142_v6, 7 }
 0x3ae   :  { %726 = vrot.lane.b32.xlu2 %v697_v59, %s1088_s30 }
 0x3d1   :  { %v515_v38 = vpop.f32.mrf.mxu3 }
 0x3de   :  { %v619_v49 = vpop.f32.mrf.mxu3 }
 0x3eb   :  { %v702_v36 = vpop.permute.xlu2 %701 }
 0x3ec   :  { %v712_v41 = vsel %vm85_vm1, %v515_v38, %v702_v36 }
 0x3f8   :  { %v706_v37 = vpop.permute.xlu2 %705 }
 0x3f9   :  { %v714_v42 = vsel %vm713_vm6, %v712_v41, %v706_v37  ;;  %v818_v37 = vperm.slane %v1142_v6, 3 }
 0x400   :  { %v719_v48 = vpop.permute.xlu2 %718 }
 0x401   :  { %v729_v50 = vsel %vm85_vm1, %v619_v49, %v719_v48  ;;  %vm775_vm1 = vweird.f32 %v1047_v61 }
 0x402   :  { %v1359_v46 = vsel %vm775_vm1, %v1047_v61, %v774_v21  ;;  %v853_v61 = vperm.slane %v1142_v6, 5 }
 0x408   :  { %v727_v52 = vpop.permute.xlu2 %726 }
 0x409   :  { %v710_v44 = vpop.permute.xlu0 %709 }
 0x40a   :  { %v716_v45 = vsel %vm715_vm7, %v714_v42, %v710_v44 }
 0x40b   :  { %982 = vmatmul.msk.f32.vlgmr.msra.gmra.mxu3 %vm39_vm0, %v716_v45 }
 0x418   :  { %v723_v51 = vpop.permute.xlu1 %722 }
 0x419   :  { %v730_v17 = vsel %vm713_vm6, %v729_v50, %v723_v51 }
 0x41a   :  { %v731_v53 = vsel %vm715_vm7, %v730_v17, %v727_v52 }
 0x41b   :  { %983 = vmatmul.msk.f32.gmra.mxu3 %vm39_vm0, %v731_v53 }
 0x48e   :  { %v756_v54 = vpop.f32.mrf.mxu3 }
 0x48f   :  { %v757_v43 = vadd.f32 %v756_v54, %v732_v40  ;;  %v31_v54 = vld [vmem:[%s1426_s1 + $0x38] sm:$0xff] }
 0x491   :  { %v762_v55 = vadd.f32 %v757_v43, %v1128_v4  ;;  %v30_v43 = vld [vmem:[%s1426_s1 + $0x18] sm:$0xff] }
 0x493   :  { %v764_v56 = vsel %vm39_vm0, %v762_v55, 0.0 }
 0x494   :  { %765 = vadd.xlane.f32.xlu2 %v764_v56 }
 0x49e   :  { %v759_v47 = vpop.f32.mrf.mxu3 }
 0x49f   :  { %v760_v25 = vadd.f32 %v759_v47, %v732_v40  ;;  %v32_v40 = vld [vmem:[%s1426_s1 + $0x58] sm:$0xff] }
 0x4a0   :  { %874 = vmatpush.msra.mxu1 %v32_v40 }
 0x4a1   :  { %v763_v57 = vadd.f32 %v760_v25, %v1135_v5 }
 0x4a2   :  { %875 = vmatpush.msra.mxu1 %v31_v54 }
 0x4a3   :  { %v767_v58 = vsel %vm39_vm0, %v763_v57, 0.0 }
 0x4a4   :  { %768 = vadd.xlane.f32.xlu0 %v767_v58  ;;  %876 = vmatpush.msra.mxu1 %v30_v43 }
 0x507   :  { %v766_v4 = vpop.xlane.xlu2 %765 }
 0x508   :  { %v777_v0 = vmul.f32 %v1359_v46, %v766_v4 }
 0x50a   :  { %v779_v1 = vsub.f32 %v762_v55, %v777_v0  ;;  %v821_v55 = vperm.slane %v1142_v6, 4 }
 0x50c   :  { %v781_v3 = vmul.f32 %v779_v1, %v779_v1 }
 0x50e   :  { %v783_v5 = vsel %vm39_vm0, %v781_v3, 0.0 }
 0x50f   :  { %784 = vadd.xlane.f32.xlu1 %v783_v5 }
 0x517   :  { %v769_v2 = vpop.xlane.xlu0 %768 }
 0x518   :  { %v778_v8 = vmul.f32 %v1359_v46, %v769_v2 }
 0x51a   :  { %v780_v10 = vsub.f32 %v763_v57, %v778_v8 }
 0x51c   :  { %v782_v19 = vmul.f32 %v780_v10, %v780_v10 }
 0x51e   :  { %v786_v20 = vsel %vm39_vm0, %v782_v19, 0.0 }
 0x51f   :  { %787 = vadd.xlane.f32.xlu2 %v786_v20 }
 0x582   :  { %v785_v26 = vpop.xlane.xlu1 %784 }
 0x583   :  { %v789_v27 = vmul.f32 %v785_v26, %v1359_v46 }
 0x585   :  { %v791_v28 = vadd.f32 1e-05, %v789_v27 }
 0x587   :  { %1048 = vrsqrt.f32 %v791_v28  ;;  %vm799_vm9 = vweird.f32 %v791_v28 }
 0x58d   :  { %v1049_v29 = vpop.eup %1048 }
 0x58e   :  { %v794_v30 = vmul.f32 %v1049_v29, %v791_v28  ;;  %vm800_vm8 = vweird.f32 %v1049_v29 }
 0x58f   :  { %vm801_vm10 = vmor %vm799_vm9, %vm800_vm8 }
 0x590   :  { %v795_v12 = vmul.f32 %v1049_v29, %v794_v30 }
 0x592   :  { %v796_v33 = vmul.f32 0.5, %v795_v12  ;;  %v788_v34 = vpop.xlane.xlu2 %787 }
 0x593   :  { %v790_v14 = vmul.f32 %v788_v34, %v1359_v46 }
 0x594   :  { %v797_v11 = vsub.f32 1.5, %v796_v33 }
 0x595   :  { %v792_v59 = vadd.f32 1e-05, %v790_v14 }
 0x596   :  { %v798_v63 = vmul.f32 %v1049_v29, %v797_v11 }
 0x597   :  { %1050 = vrsqrt.f32 %v792_v59  ;;  %vm809_vm12 = vweird.f32 %v792_v59 }
 0x598   :  { %v802_v35 = vsel %vm801_vm10, %v1049_v29, %v798_v63 }
 0x599   :  { %v813_v36 = vmul.f32 %v802_v35, %v779_v1 }
 0x59b   :  { %v816_v38 = vmul.f32 %v815_v16, %v813_v36 }
 0x59d   :  { %v1051_v41 = vpop.eup %1050  ;;  %v819_v42 = vadd.f32 %v818_v37, %v816_v38 }
 0x59e   :  { %v804_v44 = vmul.f32 %v1051_v41, %v792_v59  ;;  %vm810_vm11 = vweird.f32 %v1051_v41 }
 0x59f   :  { %984 = vmatmul.msk.f32.vlgmr.msrb.gmra.mxu0 %vm39_vm0, %v819_v42  ;;  %vm811_vm13 = vmor %vm809_vm12, %vm810_vm11 }
 0x5a0   :  { %v805_v45 = vmul.f32 %v1051_v41, %v804_v44 }
 0x5a2   :  { %v806_v48 = vmul.f32 0.5, %v805_v45 }
 0x5a4   :  { %v807_v49 = vsub.f32 1.5, %v806_v48 }
 0x5a6   :  { %v808_v50 = vmul.f32 %v1051_v41, %v807_v49 }
 0x5a8   :  { %v812_v51 = vsel %vm811_vm13, %v1051_v41, %v808_v50 }
 0x5a9   :  { %v814_v52 = vmul.f32 %v812_v51, %v780_v10 }
 0x5ab   :  { %v817_v17 = vmul.f32 %v815_v16, %v814_v52 }
 0x5ad   :  { %v820_v53 = vadd.f32 %v818_v37, %v817_v17 }
 0x5af   :  { %985 = vmatmul.msk.f32.gmra.mxu0 %vm39_vm0, %v820_v53 }
 0x61c   :  { %v845_v56 = vpop.f32.mrf.mxu0 }
 0x61d   :  { %v846_v47 = vadd.f32 %v845_v56, %v821_v55 }
 0x61f   :  { %v851_v25 = vmax.f32 %v846_v47, 0.0 }
 0x621   :  { %986 = vmatmul.msk.f32.vlgmr.msra.gmra.mxu1 %vm854_vm14, %v851_v25 }
 0x62c   :  { %v848_v57 = vpop.f32.mrf.mxu0 }
 0x62d   :  { %v849_v58 = vadd.f32 %v848_v57, %v821_v55 }
 0x62f   :  { %v852_v60 = vmax.f32 %v849_v58, 0.0 }
 0x631   :  { %987 = vmatmul.msk.f32.gmra.mxu1 %vm854_vm14, %v852_v60 }
 0x69e   :  { %v878_v62 = vpop.f32.mrf.mxu1 }
 0x69f   :  { %v879_v39 = vadd.f32 %v878_v62, %v853_v61 }
 0x6a1   :  { %v884_v7 = vadd.f32 %v879_v39, %v819_v42 }
 0x6a3   :  { %v886_v21 = vsel %vm39_vm0, %v884_v7, 0.0 }
 0x6a4   :  { %887 = vadd.xlane.f32.xlu0 %v886_v21 }
 0x6ae   :  { %v881_v4 = vpop.f32.mrf.mxu1 }
 0x6af   :  { %v882_v0 = vadd.f32 %v881_v4, %v853_v61 }
 0x6b1   :  { %v885_v1 = vadd.f32 %v882_v0, %v820_v53 }
 0x6b3   :  { %v889_v3 = vsel %vm39_vm0, %v885_v1, 0.0 }
 0x6b4   :  { %890 = vadd.xlane.f32.xlu2 %v889_v3 }
 0x717   :  { %v888_v5 = vpop.xlane.xlu0 %887 }
 0x718   :  { %v892_v2 = vmul.f32 %v888_v5, %v1359_v46 }
 0x71a   :  { %v894_v8 = vsub.f32 %v884_v7, %v892_v2 }
 0x71c   :  { %v896_v10 = vmul.f32 %v894_v8, %v894_v8 }
 0x71e   :  { %v898_v19 = vsel %vm39_vm0, %v896_v10, 0.0 }
 0x71f   :  { %899 = vadd.xlane.f32.xlu0 %v898_v19 }
 0x727   :  { %v891_v20 = vpop.xlane.xlu2 %890 }
 0x728   :  { %v893_v18 = vmul.f32 %v891_v20, %v1359_v46 }
 0x72a   :  { %v895_v22 = vsub.f32 %v885_v1, %v893_v18 }
 0x72c   :  { %v897_v23 = vmul.f32 %v895_v22, %v895_v22 }
 0x72e   :  { %v901_v24 = vsel %vm39_vm0, %v897_v23, 0.0 }
 0x72f   :  { %902 = vadd.xlane.f32.xlu1 %v901_v24 }
 0x792   :  { %v900_v26 = vpop.xlane.xlu0 %899 }
 0x793   :  { %v904_v27 = vmul.f32 %v900_v26, %v1359_v46 }
 0x795   :  { %v906_v28 = vadd.f32 1e-05, %v904_v27 }
 0x797   :  { %1052 = vrsqrt.f32 %v906_v28  ;;  %vm914_vm2 = vweird.f32 %v906_v28 }
 0x79d   :  { %v1053_v29 = vpop.eup %1052 }
 0x79e   :  { %v909_v30 = vmul.f32 %v1053_v29, %v906_v28  ;;  %vm915_vm15 = vweird.f32 %v1053_v29 }
 0x79f   :  { %vm916_vm3 = vmor %vm914_vm2, %vm915_vm15 }
 0x7a0   :  { %v910_v31 = vmul.f32 %v1053_v29, %v909_v30 }
 0x7a2   :  { %v911_v32 = vmul.f32 0.5, %v910_v31  ;;  %v903_v12 = vpop.xlane.xlu1 %902 }
 0x7a3   :  { %v905_v13 = vmul.f32 %v903_v12, %v1359_v46 }
 0x7a4   :  { %v912_v33 = vsub.f32 1.5, %v911_v32 }
 0x7a5   :  { %v907_v34 = vadd.f32 1e-05, %v905_v13 }
 0x7a6   :  { %v913_v14 = vmul.f32 %v1053_v29, %v912_v33 }
 0x7a7   :  { %1054 = vrsqrt.f32 %v907_v34  ;;  %vm924_vm5 = vweird.f32 %v907_v34 }
 0x7a8   :  { %v917_v11 = vsel %vm916_vm3, %v1053_v29, %v913_v14 }
 0x7a9   :  { %v928_v59 = vmul.f32 %v917_v11, %v894_v8 }
 0x7ab   :  { %v931_v63 = vmul.f32 %v930_v9, %v928_v59 }
 0x7ad   :  { %v1055_v16 = vpop.eup %1054  ;;  %v934_v35 = vadd.f32 %v933_v15, %v931_v63 }
 0x7ae   :  { %v919_v36 = vmul.f32 %v1055_v16, %v907_v34  ;;  %vm925_vm4 = vweird.f32 %v1055_v16 }
 0x7af   :  { %936 = vst.msk [vmem:[#allocation2] sm:$0xff] %vm39_vm0, %v934_v35  ;;  %vm926_vm6 = vmor %vm924_vm5, %vm925_vm4 }
 0x7b0   :  { %v920_v46 = vmul.f32 %v1055_v16, %v919_v36 }
 0x7b2   :  { %v921_v37 = vmul.f32 0.5, %v920_v46 }
 0x7b4   :  { %v922_v38 = vsub.f32 1.5, %v921_v37 }
 0x7b6   :  { %v923_v41 = vmul.f32 %v1055_v16, %v922_v38 }
 0x7b8   :  { %v927_v42 = vsel %vm926_vm6, %v1055_v16, %v923_v41 }
 0x7b9   :  { %v929_v44 = vmul.f32 %v927_v42, %v895_v22 }
 0x7bb   :  { %v932_v6 = vmul.f32 %v930_v9, %v929_v44 }
 0x7bd   :  { %v935_v45 = vadd.f32 %v933_v15, %v932_v6 }
 0x7bf   :  { %937 = vst.msk [vmem:[#allocation2 + $0x8] sm:$0xff] %vm39_vm0, %v935_v45 }
 0x7c0   :  { %950 = dma.vmem_to_hbm [thread:$0]  %s943_s12, 256, %s945_s10, [#allocation3], %s1092_s13, %s1092_s13, %s1087_s29  }
 0x7c1   :  { %1080 = dma.done.wait [#allocation3], 256  }
 0x7c2   :  { %1081 = vsyncadd [#allocation3], 4294967040 }
 0x7c3   :  { %955 = vsyncpa [#allocation3], 1 }

</bundles_post_ra>
